<compile_context>
chip_gen: v7x
topology: tpu7x:2x2x1
jax: 0.10.0
libtpu: 0.0.40
codegen_flags: <defaults>
</compile_context>

<pallas_src>
import jax
import jax.numpy as jnp
from jax.experimental import pallas as pl
from jax.experimental.pallas import tpu as pltpu


# ---------------- Fused decoder-step kernel (grid over LSTM layers) ----------------
def decoder_step_kernel(ids_ref, emb_ref, w_ih_ref, w_hh_ref, b_ref,
                        h_ref, c_ref, fc_w_ref, fc_b_ref,
                        preds_ref, h_out_ref, c_out_ref, x_scr):
    """
    Grid axis 0 = LSTM layer index (sequential dependency -> "arbitrary").
      ids_ref   : (N, 1)      i32   token ids
      emb_ref   : (V, P)      bf16  embedding table (P = max(E, H), zero-padded cols)
      w_ih_ref  : (1, P, 4H)  bf16  this layer's input->gates weight (zero-padded rows)
      w_hh_ref  : (1, H, 4H)  bf16  this layer's hidden->gates weight
      b_ref     : (1, 1, 4H)  f32   combined bias (b_ih + b_hh)
      h_ref,c_ref: (1, N, H)  f32   previous state for this layer
      fc_w_ref  : (H, O) bf16 ; fc_b_ref : (1, O) f32
      outputs   : preds (N, O) f32 ; h_out/c_out (1, N, H) f32
      x_scr     : (N, P) bf16 VMEM scratch carrying the layer input across grid steps
    Gate column order is [i | f | o | g].
    """
    layer = pl.program_id(0)
    n_layers = pl.num_programs(0)
    N, P = x_scr.shape
    H = h_ref.shape[2]
    V = emb_ref.shape[0]

    # ---- layer 0 only: embedding lookup as a one-hot MXU matmul ----
    @pl.when(layer == 0)
    def _():
        ids = jnp.clip(ids_ref[...], 0, V - 1)                      # (N, 1) i32, bounds-safe
        onehot = (ids == jax.lax.broadcasted_iota(jnp.int32, (N, V), 1)).astype(jnp.bfloat16)
        emb = jnp.dot(onehot, emb_ref[...], preferred_element_type=jnp.float32)
        # TODO(synk): training-mode dropout (random mask + 1/(1-p) scaling); identity here.
        x_scr[...] = emb.astype(jnp.bfloat16)                       # pad cols already zero

    x = x_scr[...]                                                  # (N, P) bf16
    h_prev = h_ref[0]                                               # (N, H) f32
    c_prev = c_ref[0]                                               # (N, H) f32

    # ---- fused gate pre-activations: two MXU pushes, one f32 accumulator ----
    gates = (jnp.dot(x, w_ih_ref[0], preferred_element_type=jnp.float32)
             + jnp.dot(h_prev.astype(jnp.bfloat16), w_hh_ref[0],
                       preferred_element_type=jnp.float32)
             + b_ref[0])                                            # (N, 4H) f32

    sig = jax.nn.sigmoid(gates[:, :3 * H])                          # i | f | o
    g_g = jnp.tanh(gates[:, 3 * H:])                                # g
    i_g = sig[:, :H]
    f_g = sig[:, H:2 * H]
    o_g = sig[:, 2 * H:3 * H]

    c_new = f_g * c_prev + i_g * g_g
    h_new = o_g * jnp.tanh(c_new)

    h_out_ref[0] = h_new
    c_out_ref[0] = c_new

    # carry this layer's output as the next layer's input
    if P == H:
        x_scr[...] = h_new.astype(jnp.bfloat16)
    else:
        x_scr[:, :H] = h_new.astype(jnp.bfloat16)                   # pad cols stay zero

    # ---- fc head on the top layer's output ----
    # TODO(synk): for realistic vocab sizes, add a "parallel" grid axis tiling fc_w over
    # 512-lane vocab blocks (streams fc_w and enables v7x dual-TC).
    @pl.when(layer == n_layers - 1)
    def _():
        preds_ref[...] = (jnp.dot(h_new.astype(jnp.bfloat16), fc_w_ref[...],
                                  preferred_element_type=jnp.float32)
                          + fc_b_ref[...])


# ---------------- Decoder forward (single pallas_call, layer-pipelined) ----------------
def decoder_forward(params, x, hidden, cell):
    """
    x      : (N,) int token ids  (PyTorch then does x.unsqueeze(0) -> seq_len == 1)
    hidden : (num_layers, N, H) f32
    cell   : (num_layers, N, H) f32
    returns: predictions (N, output_size) f32, new hidden, new cell
    """
    N = x.shape[0]
    L, _, H = hidden.shape
    V, P = params["embedding"].shape
    O = params["fc_w"].shape[1]

    ids = x.astype(jnp.int32).reshape(N, 1)

    in_specs = [
        pl.BlockSpec((N, 1), lambda l: (0, 0)),              # token ids (resident)
        pl.BlockSpec((V, P), lambda l: (0, 0)),              # embedding table (resident)
        pl.BlockSpec((1, P, 4 * H), lambda l: (l, 0, 0)),    # W_ih[l]  (streamed, pipelined)
        pl.BlockSpec((1, H, 4 * H), lambda l: (l, 0, 0)),    # W_hh[l]
        pl.BlockSpec((1, 1, 4 * H), lambda l: (l, 0, 0)),    # b[l]
        pl.BlockSpec((1, N, H), lambda l: (l, 0, 0)),        # hidden[l]
        pl.BlockSpec((1, N, H), lambda l: (l, 0, 0)),        # cell[l]
        pl.BlockSpec((H, O), lambda l: (0, 0)),              # fc_w (resident)
        pl.BlockSpec((1, O), lambda l: (0, 0)),              # fc_b
    ]
    out_specs = (
        pl.BlockSpec((N, O), lambda l: (0, 0)),              # preds (written at last layer)
        pl.BlockSpec((1, N, H), lambda l: (l, 0, 0)),        # new hidden[l]
        pl.BlockSpec((1, N, H), lambda l: (l, 0, 0)),        # new cell[l]
    )

    preds, new_h, new_c = pl.pallas_call(
        decoder_step_kernel,
        grid=(L,),
        out_shape=(jax.ShapeDtypeStruct((N, O), jnp.float32),
                   jax.ShapeDtypeStruct((L, N, H), jnp.float32),
                   jax.ShapeDtypeStruct((L, N, H), jnp.float32)),
        in_specs=in_specs,
        out_specs=out_specs,
        scratch_shapes=[pltpu.VMEM((N, P), jnp.bfloat16)],
        # update hidden/cell in place: input 5 -> output 1, input 6 -> output 2
        input_output_aliases={5: 1, 6: 2},
        compiler_params=pltpu.CompilerParams(
            dimension_semantics=("arbitrary",),
            vmem_limit_bytes=32 * 1024 * 1024),
    )(ids, params["embedding"], params["w_ih"], params["w_hh"], params["b"],
      hidden, cell, params["fc_w"], params["fc_b"])
    return preds, new_h, new_c


# ---------------- Parameter init (bf16 weights, [i|f|o|g] gate columns, padded in-dims) -------
def init_params(key, vocab_size, embedding_size, hidden_size, num_layers, output_size):
    P = max(embedding_size, hidden_size)
    H = hidden_size
    keys = jax.random.split(key, 3 + 3 * num_layers)

    emb = jax.random.normal(keys[0], (vocab_size, embedding_size), jnp.float32) * 0.1
    if embedding_size < P:
        emb = jnp.pad(emb, ((0, 0), (0, P - embedding_size)))
    params = {"embedding": emb.astype(jnp.bfloat16)}          # (V, P) bf16

    w_ih_l, w_hh_l, b_l = [], [], []
    for l in range(num_layers):
        in_dim = embedding_size if l == 0 else hidden_size
        k_ih, k_hh, k_b = keys[1 + 3 * l: 4 + 3 * l]
        # gate column layout is [i | f | o | g]; when importing real PyTorch weights
        # (which use [i | f | g | o]) swap the last two H-column blocks and use b = b_ih + b_hh.
        w_ih = jax.random.normal(k_ih, (in_dim, 4 * H), jnp.float32) * 0.1
        w_hh = jax.random.normal(k_hh, (H, 4 * H), jnp.float32) * 0.1
        if in_dim < P:
            w_ih = jnp.pad(w_ih, ((0, P - in_dim), (0, 0)))
        w_ih_l.append(w_ih.astype(jnp.bfloat16))
        w_hh_l.append(w_hh.astype(jnp.bfloat16))
        b_l.append(jax.random.normal(k_b, (1, 4 * H), jnp.float32) * 0.1)
    params["w_ih"] = jnp.stack(w_ih_l)                        # (L, P, 4H) bf16
    params["w_hh"] = jnp.stack(w_hh_l)                        # (L, H, 4H) bf16
    params["b"] = jnp.stack(b_l)                              # (L, 1, 4H) f32

    params["fc_w"] = (jax.random.normal(keys[-2], (H, output_size), jnp.float32)
                      * 0.1).astype(jnp.bfloat16)             # (H, O) bf16
    params["fc_b"] = jax.random.normal(keys[-1], (1, output_size), jnp.float32) * 0.1
    return params


# ---------------- Pure-JAX reference (identical bf16 casts / gate order) ----------------
def reference_forward(params, x, hidden, cell):
    H = hidden.shape[2]
    L = params["w_ih"].shape[0]
    P = params["embedding"].shape[1]
    x_in = params["embedding"][x]                             # (N, P) bf16 (pad cols zero)
    new_h, new_c = [], []
    for l in range(L):
        gates = (jnp.dot(x_in, params["w_ih"][l], preferred_element_type=jnp.float32)
                 + jnp.dot(hidden[l].astype(jnp.bfloat16), params["w_hh"][l],
                           preferred_element_type=jnp.float32)
                 + params["b"][l])
        sig = jax.nn.sigmoid(gates[:, :3 * H])
        g = jnp.tanh(gates[:, 3 * H:])
        i, f, o = sig[:, :H], sig[:, H:2 * H], sig[:, 2 * H:3 * H]
        c_new = f * cell[l] + i * g
        h_new = o * jnp.tanh(c_new)
        new_h.append(h_new)
        new_c.append(c_new)
        x_b = h_new.astype(jnp.bfloat16)
        if P > H:
            x_b = jnp.pad(x_b, ((0, 0), (0, P - H)))
        x_in = x_b
    preds = (jnp.dot(new_h[-1].astype(jnp.bfloat16), params["fc_w"],
                     preferred_element_type=jnp.float32) + params["fc_b"])
    return preds, jnp.stack(new_h), jnp.stack(new_c)


if __name__ == "__main__":
    # small, lane-dense config (H = O = E = 128 -> unmasked vregs / stores; batch = 8 sublanes)
    vocab_size = 128
    embedding_size = 128
    hidden_size = 128
    num_layers = 2
    output_size = 128      # `output_size` is a free (buggy) name in the torch code; use vocab size
    batch = 8

    key = jax.random.PRNGKey(0)
    k_par, k_x, k_h, k_c = jax.random.split(key, 4)

    params = init_params(k_par, vocab_size, embedding_size, hidden_size,
                         num_layers, output_size)

    x = jax.random.randint(k_x, (batch,), 0, vocab_size, dtype=jnp.int32)
    hidden = jax.random.normal(k_h, (num_layers, batch, hidden_size), jnp.float32)
    cell = jax.random.normal(k_c, (num_layers, batch, hidden_size), jnp.float32)

    # reference first (so the aliased hidden/cell buffers are never needed afterwards)
    p_ref, h_ref, c_ref = reference_forward(params, x, hidden, cell)

    preds, new_hidden, new_cell = decoder_forward(params, x, hidden, cell)
    jax.block_until_ready((preds, new_hidden, new_cell))

    assert preds.shape == (batch, output_size)
    assert new_hidden.shape == (num_layers, batch, hidden_size)
    assert new_cell.shape == (num_layers, batch, hidden_size)

    assert jnp.allclose(preds, p_ref, atol=2e-2, rtol=2e-2)
    assert jnp.allclose(new_hidden, h_ref, atol=2e-2, rtol=2e-2)
    assert jnp.allclose(new_cell, c_ref, atol=2e-2, rtol=2e-2)

    print("KERNEL_OK")
</pallas_src>

<mosaic_0001>
module attributes {stable_mosaic.version = 11 : i64} {
  func.func @decoder_step_kernel(%arg0: i32, %arg1: memref<8x1xi32, #tpu.memory_space<vmem>>, %arg2: memref<128x128xbf16, #tpu.memory_space<vmem>>, %arg3: memref<1x128x512xbf16, #tpu.memory_space<vmem>>, %arg4: memref<1x128x512xbf16, #tpu.memory_space<vmem>>, %arg5: memref<1x1x512xf32, #tpu.memory_space<vmem>>, %arg6: memref<1x8x128xf32, #tpu.memory_space<vmem>>, %arg7: memref<1x8x128xf32, #tpu.memory_space<vmem>>, %arg8: memref<128x128xbf16, #tpu.memory_space<vmem>>, %arg9: memref<1x128xf32, #tpu.memory_space<vmem>>, %arg10: memref<8x128xf32, #tpu.memory_space<vmem>>, %arg11: memref<1x8x128xf32, #tpu.memory_space<vmem>>, %arg12: memref<1x8x128xf32, #tpu.memory_space<vmem>>, %arg13: memref<8x128xbf16, #tpu.memory_space<vmem>>) attributes {dimension_semantics = [#tpu.dimension_semantics<arbitrary>], iteration_bounds = array<i64: 2>, scalar_prefetch = 0 : i64, scratch_operands = 1 : i64, tpu.core_type = #tpu.core_type<tc>, window_params = [{pipeline_mode = #tpu.pipeline_mode<synchronous>, transform_indices = @transform_0, window_bounds = array<i64: 8, 1>}, {pipeline_mode = #tpu.pipeline_mode<synchronous>, transform_indices = @transform_1, window_bounds = array<i64: 128, 128>}, {transform_indices = @transform_2, window_bounds = array<i64: 1, 128, 512>}, {transform_indices = @transform_3, window_bounds = array<i64: 1, 128, 512>}, {transform_indices = @transform_4, window_bounds = array<i64: 1, 1, 512>}, {transform_indices = @transform_5, window_bounds = array<i64: 1, 8, 128>}, {transform_indices = @transform_6, window_bounds = array<i64: 1, 8, 128>}, {pipeline_mode = #tpu.pipeline_mode<synchronous>, transform_indices = @transform_7, window_bounds = array<i64: 128, 128>}, {pipeline_mode = #tpu.pipeline_mode<synchronous>, transform_indices = @transform_8, window_bounds = array<i64: 1, 128>}, {pipeline_mode = #tpu.pipeline_mode<synchronous>, transform_indices = @transform_9, window_bounds = array<i64: 8, 128>}, {transform_indices = @transform_10, window_bounds = array<i64: 1, 8, 128>}, {transform_indices = @transform_11, window_bounds = array<i64: 1, 8, 128>}]} {
    %c0_i32 = arith.constant 0 : i32
    %0 = arith.cmpi eq, %arg0, %c0_i32 : i32
    %1 = arith.extui %0 : i1 to i32
    %c0_i32_0 = arith.constant 0 : i32
    %2 = arith.cmpi ne, %1, %c0_i32_0 : i32
    scf.if %2 {
      %c0_28 = arith.constant 0 : index
      %c0_29 = arith.constant 0 : index
      %47 = vector.load %arg1[%c0_28, %c0_29] : memref<8x1xi32, #tpu.memory_space<vmem>>, vector<8x1xi32>
      %c0_i32_30 = arith.constant 0 : i32
      %c127_i32 = arith.constant 127 : i32
      %48 = vector.broadcast %c0_i32_30 : i32 to vector<8x1xi32>
      %49 = arith.maxsi %48, %47 : vector<8x1xi32>
      %50 = vector.broadcast %c127_i32 : i32 to vector<8x1xi32>
      %51 = arith.minsi %50, %49 : vector<8x1xi32>
      %52 = tpu.iota {dimensions = array<i32: 1>} : vector<8x128xi32>
      %53 = vector.broadcast %51 : vector<8x1xi32> to vector<8x128xi32>
      %54 = arith.cmpi eq, %53, %52 : vector<8x128xi32>
      %55 = arith.extui %54 : vector<8x128xi1> to vector<8x128xi32>
      %56 = arith.sitofp %55 : vector<8x128xi32> to vector<8x128xf32>
      %57 = arith.truncf %56 : vector<8x128xf32> to vector<8x128xbf16>
      %c0_31 = arith.constant 0 : index
      %c0_32 = arith.constant 0 : index
      %58 = vector.load %arg2[%c0_31, %c0_32] : memref<128x128xbf16, #tpu.memory_space<vmem>>, vector<128x128xbf16>
      %cst_33 = arith.constant dense<0.000000e+00> : vector<8x128xf32>
      %59 = tpu.matmul %57, %58, %cst_33 {dimension_numbers = #tpu.dot_dimension_numbers<[1], [0], [0], [1], [0, 0, 1, 1], [], []>} : vector<8x128xbf16>, vector<128x128xbf16>, vector<8x128xf32> -> vector<8x128xf32>
      %60 = arith.truncf %59 : vector<8x128xf32> to vector<8x128xbf16>
      %c0_34 = arith.constant 0 : index
      %c0_35 = arith.constant 0 : index
      %61 = vector.load %arg13[%c0_34, %c0_35] : memref<8x128xbf16, #tpu.memory_space<vmem>>, vector<8x128xbf16>
      tpu.vector_store %arg13[%c0_34, %c0_35], %60 {strides = array<i32>} : memref<8x128xbf16, #tpu.memory_space<vmem>>, vector<8x128xbf16>,
    } else {
    }
    %c0 = arith.constant 0 : index
    %c0_1 = arith.constant 0 : index
    %3 = vector.load %arg13[%c0, %c0_1] : memref<8x128xbf16, #tpu.memory_space<vmem>>, vector<8x128xbf16>
    %c0_2 = arith.constant 0 : index
    %c0_3 = arith.constant 0 : index
    %c0_4 = arith.constant 0 : index
    %4 = vector.load %arg6[%c0_2, %c0_3, %c0_4] : memref<1x8x128xf32, #tpu.memory_space<vmem>>, vector<1x8x128xf32>
    %5 = vector.shape_cast %4 : vector<1x8x128xf32> to vector<8x128xf32>
    %c0_5 = arith.constant 0 : index
    %c0_6 = arith.constant 0 : index
    %c0_7 = arith.constant 0 : index
    %6 = vector.load %arg7[%c0_5, %c0_6, %c0_7] : memref<1x8x128xf32, #tpu.memory_space<vmem>>, vector<1x8x128xf32>
    %7 = vector.shape_cast %6 : vector<1x8x128xf32> to vector<8x128xf32>
    %c0_8 = arith.constant 0 : index
    %c0_9 = arith.constant 0 : index
    %c0_10 = arith.constant 0 : index
    %8 = vector.load %arg3[%c0_8, %c0_9, %c0_10] : memref<1x128x512xbf16, #tpu.memory_space<vmem>>, vector<1x128x512xbf16>
    %9 = vector.shape_cast %8 : vector<1x128x512xbf16> to vector<128x512xbf16>
    %cst = arith.constant dense<0.000000e+00> : vector<8x512xf32>
    %10 = tpu.matmul %3, %9, %cst {dimension_numbers = #tpu.dot_dimension_numbers<[1], [0], [0], [1], [0, 0, 1, 1], [], []>} : vector<8x128xbf16>, vector<128x512xbf16>, vector<8x512xf32> -> vector<8x512xf32>
    %11 = arith.truncf %5 : vector<8x128xf32> to vector<8x128xbf16>
    %c0_11 = arith.constant 0 : index
    %c0_12 = arith.constant 0 : index
    %c0_13 = arith.constant 0 : index
    %12 = vector.load %arg4[%c0_11, %c0_12, %c0_13] : memref<1x128x512xbf16, #tpu.memory_space<vmem>>, vector<1x128x512xbf16>
    %13 = vector.shape_cast %12 : vector<1x128x512xbf16> to vector<128x512xbf16>
    %cst_14 = arith.constant dense<0.000000e+00> : vector<8x512xf32>
    %14 = tpu.matmul %11, %13, %cst_14 {dimension_numbers = #tpu.dot_dimension_numbers<[1], [0], [0], [1], [0, 0, 1, 1], [], []>} : vector<8x128xbf16>, vector<128x512xbf16>, vector<8x512xf32> -> vector<8x512xf32>
    %15 = arith.addf %10, %14 : vector<8x512xf32>
    %c0_15 = arith.constant 0 : index
    %c0_16 = arith.constant 0 : index
    %c0_17 = arith.constant 0 : index
    %16 = vector.load %arg5[%c0_15, %c0_16, %c0_17] : memref<1x1x512xf32, #tpu.memory_space<vmem>>, vector<1x1x512xf32>
    %17 = vector.shape_cast %16 : vector<1x1x512xf32> to vector<1x512xf32>
    %18 = vector.broadcast %17 : vector<1x512xf32> to vector<8x512xf32>
    %19 = arith.addf %15, %18 : vector<8x512xf32>
    %20 = vector.extract_strided_slice %19 {offsets = [0, 0], sizes = [8, 384], strides = [1, 1]} : vector<8x512xf32> to vector<8x384xf32>
    %21 = arith.negf %20 : vector<8x384xf32>
    %22 = math.exp %21 : vector<8x384xf32>
    %cst_18 = arith.constant 1.000000e+00 : f32
    %23 = vector.broadcast %cst_18 : f32 to vector<8x384xf32>
    %24 = arith.addf %23, %22 : vector<8x384xf32>
    %25 = arith.divf %23, %24 : vector<8x384xf32>
    %26 = vector.extract_strided_slice %19 {offsets = [0, 384], sizes = [8, 128], strides = [1, 1]} : vector<8x512xf32> to vector<8x128xf32>
    %27 = math.tanh %26 : vector<8x128xf32>
    %28 = vector.extract_strided_slice %25 {offsets = [0, 0], sizes = [8, 128], strides = [1, 1]} : vector<8x384xf32> to vector<8x128xf32>
    %29 = vector.extract_strided_slice %25 {offsets = [0, 128], sizes = [8, 128], strides = [1, 1]} : vector<8x384xf32> to vector<8x128xf32>
    %30 = vector.extract_strided_slice %25 {offsets = [0, 256], sizes = [8, 128], strides = [1, 1]} : vector<8x384xf32> to vector<8x128xf32>
    %31 = arith.mulf %29, %7 : vector<8x128xf32>
    %32 = arith.mulf %28, %27 : vector<8x128xf32>
    %33 = arith.addf %31, %32 : vector<8x128xf32>
    %34 = math.tanh %33 : vector<8x128xf32>
    %35 = arith.mulf %30, %34 : vector<8x128xf32>
    %c0_19 = arith.constant 0 : index
    %c0_20 = arith.constant 0 : index
    %c0_21 = arith.constant 0 : index
    %36 = vector.load %arg11[%c0_19, %c0_20, %c0_21] : memref<1x8x128xf32, #tpu.memory_space<vmem>>, vector<1x8x128xf32>
    %37 = vector.shape_cast %36 : vector<1x8x128xf32> to vector<8x128xf32>
    %38 = vector.shape_cast %35 : vector<8x128xf32> to vector<1x8x128xf32>
    tpu.vector_store %arg11[%c0_19, %c0_20, %c0_21], %38 {strides = array<i32>} : memref<1x8x128xf32, #tpu.memory_space<vmem>>, vector<1x8x128xf32>,
    %c0_22 = arith.constant 0 : index
    %c0_23 = arith.constant 0 : index
    %c0_24 = arith.constant 0 : index
    %39 = vector.load %arg12[%c0_22, %c0_23, %c0_24] : memref<1x8x128xf32, #tpu.memory_space<vmem>>, vector<1x8x128xf32>
    %40 = vector.shape_cast %39 : vector<1x8x128xf32> to vector<8x128xf32>
    %41 = vector.shape_cast %33 : vector<8x128xf32> to vector<1x8x128xf32>
    tpu.vector_store %arg12[%c0_22, %c0_23, %c0_24], %41 {strides = array<i32>} : memref<1x8x128xf32, #tpu.memory_space<vmem>>, vector<1x8x128xf32>,
    %42 = arith.truncf %35 : vector<8x128xf32> to vector<8x128xbf16>
    %c0_25 = arith.constant 0 : index
    %c0_26 = arith.constant 0 : index
    %43 = vector.load %arg13[%c0_25, %c0_26] : memref<8x128xbf16, #tpu.memory_space<vmem>>, vector<8x128xbf16>
    tpu.vector_store %arg13[%c0_25, %c0_26], %42 {strides = array<i32>} : memref<8x128xbf16, #tpu.memory_space<vmem>>, vector<8x128xbf16>,
    %c1_i32 = arith.constant 1 : i32
    %44 = arith.cmpi eq, %arg0, %c1_i32 : i32
    %45 = arith.extui %44 : i1 to i32
    %c0_i32_27 = arith.constant 0 : i32
    %46 = arith.cmpi ne, %45, %c0_i32_27 : i32
    scf.if %46 {
      %47 = arith.truncf %35 : vector<8x128xf32> to vector<8x128xbf16>
      %c0_28 = arith.constant 0 : index
      %c0_29 = arith.constant 0 : index
      %48 = vector.load %arg8[%c0_28, %c0_29] : memref<128x128xbf16, #tpu.memory_space<vmem>>, vector<128x128xbf16>
      %cst_30 = arith.constant dense<0.000000e+00> : vector<8x128xf32>
      %49 = tpu.matmul %47, %48, %cst_30 {dimension_numbers = #tpu.dot_dimension_numbers<[1], [0], [0], [1], [0, 0, 1, 1], [], []>} : vector<8x128xbf16>, vector<128x128xbf16>, vector<8x128xf32> -> vector<8x128xf32>
      %c0_31 = arith.constant 0 : index
      %c0_32 = arith.constant 0 : index
      %50 = vector.load %arg9[%c0_31, %c0_32] : memref<1x128xf32, #tpu.memory_space<vmem>>, vector<1x128xf32>
      %51 = vector.broadcast %50 : vector<1x128xf32> to vector<8x128xf32>
      %52 = arith.addf %49, %51 : vector<8x128xf32>
      %c0_33 = arith.constant 0 : index
      %c0_34 = arith.constant 0 : index
      %53 = vector.load %arg10[%c0_33, %c0_34] : memref<8x128xf32, #tpu.memory_space<vmem>>, vector<8x128xf32>
      tpu.vector_store %arg10[%c0_33, %c0_34], %52 {strides = array<i32>} : memref<8x128xf32, #tpu.memory_space<vmem>>, vector<8x128xf32>,
    } else {
    }
    return
  }
  func.func @transform_0(%arg0: i32) -> (i32, i32) {
    %c0_i32 = arith.constant 0 : i32
    %c0_i32_0 = arith.constant 0 : i32
    %c0_i32_1 = arith.constant 0 : i32
    return %c0_i32, %c0_i32_0 : i32, i32
  }
  func.func @transform_1(%arg0: i32) -> (i32, i32) {
    %c0_i32 = arith.constant 0 : i32
    %c0_i32_0 = arith.constant 0 : i32
    %c0_i32_1 = arith.constant 0 : i32
    return %c0_i32, %c0_i32_0 : i32, i32
  }
  func.func @transform_2(%arg0: i32) -> (i32, i32, i32) {
    %c0_i32 = arith.constant 0 : i32
    %c0_i32_0 = arith.constant 0 : i32
    %c0_i32_1 = arith.constant 0 : i32
    return %arg0, %c0_i32, %c0_i32_0 : i32, i32, i32
  }
  func.func @transform_3(%arg0: i32) -> (i32, i32, i32) {
    %c0_i32 = arith.constant 0 : i32
    %c0_i32_0 = arith.constant 0 : i32
    %c0_i32_1 = arith.constant 0 : i32
    return %arg0, %c0_i32, %c0_i32_0 : i32, i32, i32
  }
  func.func @transform_4(%arg0: i32) -> (i32, i32, i32) {
    %c0_i32 = arith.constant 0 : i32
    %c0_i32_0 = arith.constant 0 : i32
    %c0_i32_1 = arith.constant 0 : i32
    return %arg0, %c0_i32, %c0_i32_0 : i32, i32, i32
  }
  func.func @transform_5(%arg0: i32) -> (i32, i32, i32) {
    %c0_i32 = arith.constant 0 : i32
    %c0_i32_0 = arith.constant 0 : i32
    %c0_i32_1 = arith.constant 0 : i32
    return %arg0, %c0_i32, %c0_i32_0 : i32, i32, i32
  }
  func.func @transform_6(%arg0: i32) -> (i32, i32, i32) {
    %c0_i32 = arith.constant 0 : i32
    %c0_i32_0 = arith.constant 0 : i32
    %c0_i32_1 = arith.constant 0 : i32
    return %arg0, %c0_i32, %c0_i32_0 : i32, i32, i32
  }
  func.func @transform_7(%arg0: i32) -> (i32, i32) {
    %c0_i32 = arith.constant 0 : i32
    %c0_i32_0 = arith.constant 0 : i32
    %c0_i32_1 = arith.constant 0 : i32
    return %c0_i32, %c0_i32_0 : i32, i32
  }
  func.func @transform_8(%arg0: i32) -> (i32, i32) {
    %c0_i32 = arith.constant 0 : i32
    %c0_i32_0 = arith.constant 0 : i32
    %c0_i32_1 = arith.constant 0 : i32
    return %c0_i32, %c0_i32_0 : i32, i32
  }
  func.func @transform_9(%arg0: i32) -> (i32, i32) {
    %c0_i32 = arith.constant 0 : i32
    %c0_i32_0 = arith.constant 0 : i32
    %c0_i32_1 = arith.constant 0 : i32
    return %c0_i32, %c0_i32_0 : i32, i32
  }
  func.func @transform_10(%arg0: i32) -> (i32, i32, i32) {
    %c0_i32 = arith.constant 0 : i32
    %c0_i32_0 = arith.constant 0 : i32
    %c0_i32_1 = arith.constant 0 : i32
    return %arg0, %c0_i32, %c0_i32_0 : i32, i32, i32
  }
  func.func @transform_11(%arg0: i32) -> (i32, i32, i32) {
    %c0_i32 = arith.constant 0 : i32
    %c0_i32_0 = arith.constant 0 : i32
    %c0_i32_1 = arith.constant 0 : i32
    return %arg0, %c0_i32, %c0_i32_0 : i32, i32, i32
  }
}

</mosaic_0001>

<bundles_post_ra>
// kernel: tpu_custom_call.1
= control target key start
LH: loop header
LB: loop body
LE: loop exit
PB: predicated region body
PF: predicated region fallthrough
CT: control target
= control target key end

     0   :  { %s2901_s0 = inlined_call_operand.vmem [shape: s32[8,1], index: 0, kind: input, shape index: {}]   ;;  %s2902_s1 = inlined_call_operand.vmem [shape: bf16[128,128], index: 1, kind: input, shape index: {}]   ;;  %s2903_s2 = inlined_call_operand.hbm [shape: bf16[2,128,512], index: 2, kind: input, shape index: {}]   ;;  %s2904_s3 = inlined_call_operand.hbm [shape: bf16[2,128,512], index: 3, kind: input, shape index: {}]   ;;  %s2905_s4 = inlined_call_operand.vmem [shape: f32[2,1,512], index: 4, kind: input, shape index: {}]   ;;  %s2906_s5 = inlined_call_operand.hbm [shape: f32[2,8,128], index: 5, kind: input, shape index: {}, may-alias: {5,10}]   ;;  %s2907_s6 = inlined_call_operand.hbm [shape: f32[2,8,128], index: 6, kind: input, shape index: {}, may-alias: {6,11}]   ;;  %s2908_s7 = inlined_call_operand.hbm [shape: bf16[128,128], index: 7, kind: input, shape index: {}]   ;;  %s2909_s8 = inlined_call_operand.vmem [shape: f32[1,128], index: 8, kind: input, shape index: {}]   ;;  %s2910_s9 = inlined_call_operand.hbm [shape: f32[8,128], index: 9, kind: output, shape index: {0}]   ;;  %s2911_s10 = inlined_call_operand.hbm [shape: f32[2,8,128], index: 10, kind: output, shape index: {1}, may-alias: {5,10}]   ;;  %s2912_s11 = inlined_call_operand.hbm [shape: f32[2,8,128], index: 11, kind: output, shape index: {2}, may-alias: {6,11}]  }
   0x1   :  { %2931 = sst [smem:[#allocation27_spill]] %s2903_s2 }
   0x2   :  { %2932 = sst [smem:[#allocation28_spill]] %s2904_s3 }
   0x3   :  { %2933 = sst [smem:[#allocation29_spill]] %s2908_s7 }
   0x4   :  { %2934 = sst [smem:[#allocation30_spill]] %s2910_s9 }
   0x5   :  { %2935 = sst [smem:[#allocation31_spill]] %s2911_s10 }
   0x6   :  { %2936 = sst [smem:[#allocation32_spill]] %s2912_s11 }
   0x7   :  { %17 = vsyncpa [#allocation4], 0 }
   0x8   :  { %19 = vsyncpa [#allocation4 + $0x1], 0 }
   0x9   :  { %20 = vsyncpa [#allocation7], 0 }
   0xa   :  { %22 = vsyncpa [#allocation7 + $0x1], 0 }
   0xb   :  { %23 = vsyncpa [#allocation10], 0 }
   0xc   :  { %25 = vsyncpa [#allocation10 + $0x1], 0 }
   0xd   :  { %26 = vsyncpa [#allocation5], 0 }
   0xe   :  { %27 = vsyncpa [#allocation14], 0 }
   0xf   :  { %29 = vsyncpa [#allocation14 + $0x1], 0  ;;  %s2411_s17 = smov 0   ;;  %s2413_s18 = smov 0  }
  0x10   :  { %s2415_s19 = smov 0   ;;  %s2417_s20 = smov 0  }
  0x11 LB: > { %2937 = sst [smem:[#allocation22_spill]] %s2326_s19  ;;  %s2430_s21 = sadd.s32 4294967295, %s2330_s20   ;;  %s2330_s20 = sphi %s2417_s20, %s2978_s20   ;;  %s2326_s19 = sphi %s2415_s19, %s2983_s19   ;;  %s2322_s18 = sphi %s2413_s18, %s2982_s18   ;;  %s2318_s17 = sphi %s2411_s17, %s2981_s17  }
  0x12   : > { %s2913_s22 = sadd.s32 4294967294, %s2330_s20   ;;  %s2434_s23 = sadd.s32 1, %s2330_s20  }
  0x13   : > { %2938 = sst [smem:[#allocation23_spill]] %s2434_s23  ;;  %s84_s24 = sadd.s32 1, %s2326_s19 }
  0x14   : > { %s81_s25 = ssub.s32 %s2330_s20, %s2434_s23  ;;  %p91_p0 = scmp.ne.s32.totalorder %s2326_s19, %s2322_s18 }
  0x15   : > { %p82_p1 = scmp.eq.s32.totalorder %s81_s25, 0  ;;  %p92_p2 = scmp.eq.s32.totalorder %s2330_s20, 0 }
  0x16   : > { %p97_p3 = scmp.ne.s32.totalorder %s2322_s18, %s2318_s17  ;;  %p2919_p4 = scmp.eq.s32.totalorder %s2430_s21, 0 }
  0x17   : > { %s2445_s26 = scalar_select %p82_p1, %s2326_s19, %s84_s24  }
  0x18   : > { %p2447_p5 = por %p92_p2, %p91_p0  ;;  %p2453_p6 = por %p2919_p4, %p97_p3 }
  0x19   : > { %2939 = sst [smem:[#allocation24_spill]] %s2445_s26  ;;  %p2916_p7 = scmp.eq.s32.totalorder %s2430_s21, 1 }
  0x1a   : > { %s2940_s27 = scalar_select %p2447_p5, 1, 0 }
  0x1b   : > { %s2941_s28 = scalar_select %p2453_p6, 1, 0 }
  0x1c   : > { %p294_p8 = scmp.eq.s32.totalorder %s2913_s22, 1  ;;  %p1643_p9 = scmp.ge.s32.totalorder %s2330_s20, 1 }
  0x1d   : > { %p327_p10 = scmp.lt.s32.totalorder %s2330_s20, 3  ;;  %p2464_p11 = por %p2916_p7, %p91_p0 }
  0x1e   : > { %p2468_p12 = por %p294_p8, %p97_p3  ;;  %s2332_s13 = smov [#allocation11]  }
  0x1f   : > { %s2942_s29 = scalar_select %p2464_p11, 1, 0 }
  0x20   : > { %s2944_s30 = scalar_select %p2468_p12, 1, 0 }
  0x21   : > { %2943 = sst [smem:[#allocation25_spill]] %s2942_s29  ;;  %p2472_p13 = pnand %p1643_p9, %p327_p10 }
  0x22   : > { %2945 = sst [smem:[#allocation26_spill]] %s2944_s30  ;;  %s345_s14 = sshll.u32 %s2332_s13, 4  ;;  %s346_s14 = int_to_ptr.vmem [resolvable:$true] %s345_s14 }
  0x23   : > { %s2946_s12 = scalar_select %p2472_p13, 1, 0 }
  0x24   : > { %p1842_p2 = pneg %p2472_p13  ;;  %s2488_s16 = sand.u32 1, %s2326_s19  }
  0x25   : > { %s2948_s7 = sld [smem:[#allocation29_spill]] }
  0x26   : > { %p2481_p0 = pnand %p1842_p2, %p2919_p4 }
  0x28   : > { %p2048_p10 = pneg %p2481_p0 }
  0x2b   : > { %s2046_s22 = scalar_lea.hbm %s2948_s7, 1024 }
  0x2c   : > { %p2047_p9 = scmp.ne.s32.totalorder %s2948_s7, %s2046_s22  ;;  %p2053_p3 = scmp.lt.u32.totalorder %s2046_s22, %s2948_s7 }
  0x2e   : > { %p2049_p2 = pnand %p2048_p10, %p2047_p9 }
  0x30   : > { %p2050_p7 = pneg %p2049_p2 }
  0x32   : > { %p2055_p1 = pnand %p2053_p3, %p2050_p7 }
  0x34   : > { %2058 = shalt.err (!%p2055_p1)
}
  0x35   : > { %s2059_s19 = scalar_lea.vmem %s346_s14, 1024  ;;  %p2067_p11 = scmp.lt.s32.totalorder %s346_s14, %s346_s14 }
  0x36   : > { %p2060_p4 = scmp.ne.s32.totalorder %s346_s14, %s2059_s19  ;;  %p2068_p6 = scmp.lt.s32.totalorder %s2059_s19, %s2059_s19 }
  0x38   : > { %p2062_p8 = pnand %p2060_p4, %p2048_p10  ;;  %p2069_p13 = por %p2068_p6, %p2067_p11 }
  0x3a   : > { %p2063_p12 = pneg %p2062_p8 }
  0x3c   : > { %p2070_p5 = pnand %p2069_p13, %p2063_p12 }
  0x3e   : > { %2073 = shalt.err (!%p2070_p5)
}
  0x3f   : > { %s2333_s23 = smov 64   ;;  %s2334_s22 = smov 4  }
  0x40   : > { %1845 = dma.hbm_to_vmem [thread:$0]  (!%p2481_p0), %s2948_s7, 1024, %s346_s14, [#allocation10], %s2333_s23, %s2333_s23, %s2334_s22  }
  0x41   : > { %s1762_s24 = sshll.u32 %s2330_s20, 12  ;;  %p2949_p4 = scmp.ne.s32.totalorder %s2940_s27, 0 }
  0x42   : > { %p2950_p6 = scmp.lt.s32.totalorder %s2330_s20, 2  ;;  %s2924_s25 = sand.u32 1, %s2330_s20  }
  0x43   : > { %s2952_s3 = sld [smem:[#allocation28_spill]]  ;;  %s2953_s15 = sshll.u32 %s2488_s16, 8 }
  0x44   : > { %p2512_p7 = pnand %p2950_p6, %p2949_p4  ;;  %s387_s14 = scalar_lea.vmem [#allocation6], %s2953_s15 }
  0x45   : > { %s394_s27 = sshll.u32 %s387_s14, 4  ;;  %s2530_s23 = scalar_lea.sflag [#allocation7], %s2924_s25  ;;  %s2526_s27 = int_to_ptr.vmem [resolvable:$true] %s394_s27 }
  0x46   : > { %s2951_s19 = scalar_select %p2512_p7, 1, 0 }
  0x47   : > { %p2536_p11 = pneg %p2512_p7 }
  0x49   : > { %s2522_s9 = scalar_lea.hbm %s2952_s3, %s1762_s24  ;;  %s2079_s13 = scalar_lea.hbm %s2952_s3, 8192 }
  0x4a   : > { %s2074_s22 = scalar_lea.hbm %s2522_s9, 4096  ;;  %p2080_p1 = scmp.lt.u32.totalorder %s2522_s9, %s2952_s3 }
  0x4b   : > { %p2075_p5 = scmp.ne.s32.totalorder %s2522_s9, %s2074_s22  ;;  %p2081_p0 = scmp.lt.u32.totalorder %s2079_s13, %s2074_s22 }
  0x4c   : > { %p2083_p8 = scmp.lt.u32.totalorder %s2074_s22, %s2522_s9 }
  0x4d   : > { %p2077_p12 = pnand %p2536_p11, %p2075_p5  ;;  %p2082_p3 = por %p2081_p0, %p2080_p1 }
  0x4f   : > { %p2078_p13 = pneg %p2077_p12  ;;  %p2084_p9 = por %p2083_p8, %p2082_p3 }
  0x51   : > { %p2085_p10 = pnand %p2084_p9, %p2078_p13 }
  0x53   : > { %2088 = shalt.err (!%p2085_p10)
}
  0x54   : > { %s2089_s25 = scalar_lea.vmem %s2526_s27, 4096  ;;  %s2335_s17 = smov [#allocation6]  }
  0x55   : > { %p2090_p2 = scmp.ne.s32.totalorder %s2526_s27, %s2089_s25  ;;  %s2094_s30 = sshll.u32 %s2335_s17, 4  ;;  %s2095_s30 = int_to_ptr.vmem [resolvable:$false] %s2094_s30 }
  0x56   : > { %s2096_s15 = scalar_lea.vmem %s2095_s30, 8192  ;;  %p2097_p5 = scmp.lt.s32.totalorder %s2526_s27, %s2095_s30 }
  0x57   : > { %p2092_p4 = pnand %p2090_p2, %p2536_p11  ;;  %p2098_p12 = scmp.lt.s32.totalorder %s2096_s15, %s2089_s25 }
  0x59   : > { %p2093_p6 = pneg %p2092_p4  ;;  %p2099_p1 = por %p2098_p12, %p2097_p5 }
  0x5b   : > { %p2100_p0 = pnand %p2099_p1, %p2093_p6 }
  0x5d   : > { %2103 = shalt.err (!%p2100_p0)
}
  0x5e   : > { %s2336_s22 = smov 256   ;;  %s2337_s13 = smov 16  }
  0x5f   : > { %1852 = dma.hbm_to_vmem [thread:$0]  (!%p2512_p7), %s2522_s9, 4096, %s2526_s27, %s2530_s23, %s2336_s22, %s2336_s22, %s2337_s13  }
  0x60   : > { %s2955_s2 = sld [smem:[#allocation27_spill]]  ;;  %s2956_s30 = sshll.u32 %s2488_s16, 8 }
  0x61   : > { %s366_s15 = scalar_lea.vmem [#allocation3], %s2956_s30  ;;  %s1652_s7 = sshll.u32 %s2488_s16, 3 }
  0x62   : > { %s373_s3 = sshll.u32 %s366_s15, 4  ;;  %s363_s11 = scalar_lea.sflag [#allocation4], %s2488_s16  ;;  %s2573_s3 = int_to_ptr.vmem [resolvable:$true] %s373_s3 }
  0x66   : > { %s2568_s17 = scalar_lea.hbm %s2955_s2, %s1762_s24  ;;  %s2109_s24 = scalar_lea.hbm %s2955_s2, 8192 }
  0x67   : > { %s2104_s10 = scalar_lea.hbm %s2568_s17, 4096  ;;  %p2110_p9 = scmp.lt.u32.totalorder %s2568_s17, %s2955_s2 }
  0x68   : > { %p2105_p13 = scmp.ne.s32.totalorder %s2568_s17, %s2104_s10  ;;  %p2111_p10 = scmp.lt.u32.totalorder %s2109_s24, %s2104_s10 }
  0x69   : > { %p2113_p4 = scmp.lt.u32.totalorder %s2104_s10, %s2568_s17 }
  0x6a   : > { %p2107_p3 = pnand %p2105_p13, %p2536_p11  ;;  %p2112_p2 = por %p2111_p10, %p2110_p9 }
  0x6c   : > { %p2108_p8 = pneg %p2107_p3  ;;  %p2114_p6 = por %p2113_p4, %p2112_p2 }
  0x6e   : > { %p2115_p5 = pnand %p2114_p6, %p2108_p8 }
  0x70   : > { %2118 = shalt.err (!%p2115_p5)
}
  0x71   : > { %s2119_s30 = scalar_lea.vmem %s2573_s3, 4096  ;;  %s2338_s15 = smov [#allocation3]  }
  0x72   : > { %p2120_p12 = scmp.ne.s32.totalorder %s2573_s3, %s2119_s30  ;;  %s2124_s9 = sshll.u32 %s2338_s15, 4  ;;  %s2125_s9 = int_to_ptr.vmem [resolvable:$false] %s2124_s9 }
  0x73   : > { %s2126_s27 = scalar_lea.vmem %s2125_s9, 8192  ;;  %p2127_p13 = scmp.lt.s32.totalorder %s2573_s3, %s2125_s9 }
  0x74   : > { %p2122_p1 = pnand %p2120_p12, %p2536_p11  ;;  %p2128_p3 = scmp.lt.s32.totalorder %s2126_s27, %s2119_s30 }
  0x76   : > { %p2123_p0 = pneg %p2122_p1  ;;  %p2129_p9 = por %p2128_p3, %p2127_p13 }
  0x78   : > { %p2130_p10 = pnand %p2129_p9, %p2123_p0 }
  0x7a   : > { %2133 = shalt.err (!%p2130_p10)
}
  0x7b   : > { %1849 = dma.hbm_to_vmem [thread:$0]  (!%p2512_p7), %s2568_s17, 4096, %s2573_s3, %s363_s11, %s2336_s22, %s2336_s22, %s2337_s13  }
  0x7c   : > { %s1653_s10 = sshll.u32 %s2330_s20, 7  ;;  %s415_s24 = scalar_lea.vmem [#allocation8], %s1652_s7 }
  0x7d   : > { %s422_s25 = sshll.u32 %s415_s24, 4  ;;  %s420_s15 = scalar_lea.hbm %s2906_s5, %s1653_s10  ;;  %s423_s25 = int_to_ptr.vmem [resolvable:$true] %s422_s25 }
  0x7e   : > { %s2134_s9 = scalar_lea.hbm %s420_s15, 128  ;;  %s2139_s29 = scalar_lea.hbm %s2906_s5, 256 }
  0x7f   : > { %p2135_p8 = scmp.ne.s32.totalorder %s420_s15, %s2134_s9  ;;  %p2140_p6 = scmp.lt.u32.totalorder %s420_s15, %s2906_s5 }
  0x80   : > { %p2141_p5 = scmp.lt.u32.totalorder %s2139_s29, %s2134_s9  ;;  %p2143_p1 = scmp.lt.u32.totalorder %s2134_s9, %s420_s15 }
  0x81   : > { %p2137_p2 = pnand %p2135_p8, %p2536_p11 }
  0x82   : > { %p2142_p12 = por %p2141_p5, %p2140_p6 }
  0x83   : > { %p2138_p4 = pneg %p2137_p2 }
  0x84   : > { %p2144_p0 = por %p2143_p1, %p2142_p12 }
  0x86   : > { %p2145_p13 = pnand %p2144_p0, %p2138_p4 }
  0x88   : > { %2148 = shalt.err (!%p2145_p13)
}
  0x89   : > { %s2149_s22 = scalar_lea.vmem %s423_s25, 128  ;;  %s2339_s13 = smov [#allocation8]  }
  0x8a   : > { %p2150_p3 = scmp.ne.s32.totalorder %s423_s25, %s2149_s22  ;;  %s2154_s17 = sshll.u32 %s2339_s13, 4  ;;  %s2155_s17 = int_to_ptr.vmem [resolvable:$false] %s2154_s17 }
  0x8b   : > { %s2156_s2 = scalar_lea.vmem %s2155_s17, 256  ;;  %p2157_p8 = scmp.lt.s32.totalorder %s423_s25, %s2155_s17 }
  0x8c   : > { %p2152_p9 = pnand %p2150_p3, %p2536_p11  ;;  %p2158_p2 = scmp.lt.s32.totalorder %s2156_s2, %s2149_s22 }
  0x8e   : > { %p2153_p10 = pneg %p2152_p9  ;;  %p2159_p7 = por %p2158_p2, %p2157_p8 }
  0x90   : > { %p2160_p5 = pnand %p2159_p7, %p2153_p10 }
  0x92   : > { %2163 = shalt.err (!%p2160_p5)
}
  0x93   : > { %p2957_p6 = scmp.ne.s32.totalorder %s2951_s19, 0  ;;  %s2628_s14 = scalar_lea.hbm %s2907_s6, %s1653_s10 }
  0x94   : > { %s433_s30 = scalar_lea.vmem [#allocation9], %s1652_s7  ;;  %s2958_s27 = sand.u32 1, %s2330_s20  }
  0x95   : > { %1855 = dma.hbm_to_vmem [thread:$0]  (!%p2957_p6), %s420_s15, 128, %s423_s25, %s2530_s23  }
  0x96   : > { %s440_s9 = sshll.u32 %s433_s30, 4  ;;  %s430_s3 = scalar_lea.sflag [#allocation10], %s2958_s27  ;;  %s441_s9 = int_to_ptr.vmem [resolvable:$true] %s440_s9 }
  0x97   : > { %s2164_s11 = scalar_lea.hbm %s2628_s14, 128  ;;  %s2169_s10 = scalar_lea.hbm %s2907_s6, 256 }
  0x98   : > { %p2165_p7 = scmp.ne.s32.totalorder %s2628_s14, %s2164_s11  ;;  %p2170_p1 = scmp.lt.u32.totalorder %s2628_s14, %s2907_s6 }
  0x99   : > { %p2171_p0 = scmp.lt.u32.totalorder %s2169_s10, %s2164_s11  ;;  %p2173_p3 = scmp.lt.u32.totalorder %s2164_s11, %s2628_s14 }
  0x9a   : > { %p2167_p4 = pnand %p2165_p7, %p2536_p11 }
  0x9b   : > { %p2172_p13 = por %p2171_p0, %p2170_p1 }
  0x9c   : > { %p2168_p12 = pneg %p2167_p4 }
  0x9d   : > { %p2174_p9 = por %p2173_p3, %p2172_p13 }
  0x9f   : > { %p2175_p10 = pnand %p2174_p9, %p2168_p12 }
  0xa1   : > { %2178 = shalt.err (!%p2175_p10)
}
  0xa2   : > { %s2179_s7 = scalar_lea.vmem %s441_s9, 128  ;;  %s2340_s22 = smov [#allocation9]  }
  0xa3   : > { %p2180_p8 = scmp.ne.s32.totalorder %s441_s9, %s2179_s7  ;;  %s2184_s13 = sshll.u32 %s2340_s22, 4  ;;  %s2185_s13 = int_to_ptr.vmem [resolvable:$false] %s2184_s13 }
  0xa4   : > { %s2186_s17 = scalar_lea.vmem %s2185_s13, 256  ;;  %p2187_p7 = scmp.lt.s32.totalorder %s441_s9, %s2185_s13 }
  0xa5   : > { %p2182_p2 = pnand %p2180_p8, %p2536_p11  ;;  %p2188_p4 = scmp.lt.s32.totalorder %s2186_s17, %s2179_s7 }
  0xa7   : > { %p2183_p5 = pneg %p2182_p2  ;;  %p2189_p6 = por %p2188_p4, %p2187_p7 }
  0xa9   : > { %p2190_p0 = pnand %p2189_p6, %p2183_p5 }
  0xab   : > { %2193 = shalt.err (!%p2190_p0)
}
  0xac   : > { %p2959_p1 = scmp.ne.s32.totalorder %s2951_s19, 0  ;;  %p2960_p12 = scmp.ne.s32.totalorder %s2946_s12, 0 }
  0xad   : > { %s451_s26 = sand.u32 (!%p2960_p12), 1, %s2322_s18   ;;  %p2961_p11 = scmp.ne.s32.totalorder (!%p2960_p12), %s2941_s28, 0 }
  0xae   : > { %1858 = dma.hbm_to_vmem [thread:$0]  (!%p2959_p1), %s2628_s14, 128, %s441_s9, %s430_s3  }
  0xaf   : > { %449 = sbr.rel (%p2960_p12) target bundleno = 1171 (0x493), region = 56  ;;  %s1657_s2 = sshll.u32 (!%p2960_p12), %s451_s26, 8 }
  0xb0   : > { %s452_s29 = scalar_lea.sflag (!%p2960_p12), [#allocation4], %s451_s26  ;;  %s2654_s24 = scalar_lea.vmem (!%p2960_p12), [#allocation3], %s1657_s2 }
  0xb6   : > { %2293 = dma.done.wait (%p2961_p11), %s452_s29, 4096  }
  0xb7   : > { %2295 = vsyncadd (%p2961_p11), %s452_s29, 4294963200  ;;  %s2661_s19 = sand.u32 1, %s2430_s21   ;;  %s2664_s12 = scalar_lea.vmem [#allocation6], %s1657_s2 }
  0xb8   : > { %s461_s14 = scalar_lea.sflag [#allocation7], %s2661_s19 }
  0xb9   : > { %2297 = dma.done.wait (%p2961_p11), %s461_s14, 4224  }
  0xba   : > { %2299 = vsyncadd (%p2961_p11), %s461_s14, 4294963072  ;;  %s2670_s30 = sshll.u32 %s451_s26, 3  ;;  %s479_s27 = scalar_lea.sflag [#allocation10], %s2661_s19 }
  0xbb   : > { %s473_s9 = scalar_lea.vmem [#allocation8], %s2670_s30  ;;  %s482_s3 = scalar_lea.vmem [#allocation9], %s2670_s30 }
  0xbc   : > { %2301 = dma.done.wait (%p2961_p11), %s479_s27, 128  }
  0xbd   : > { %2303 = vsyncadd (%p2961_p11), %s479_s27, 4294967168  ;;  %p2962_p6 = scmp.eq.s32.totalorder %s2430_s21, 0 }
  0xbf   : > { %2305 = dma.done.wait (%p2962_p6), [#allocation10], 1024   ;;  %p2963_p13 = pmov %p2962_p6 }
  0xc0   : > { %p549_p3 = scmp.lt.s32.totalorder %s2430_s21, 1  ;;  %s541_s28 = scalar_lea.vmem [#allocation13], %s2670_s30 }
  0xc1   : > { %2307 = vsyncadd (%p2963_p13), [#allocation10], 4294966272  ;;  %s548_s16 = scalar_lea.vmem [#allocation15], %s2670_s30  ;;  %p2964_p9 = scmp.ne.s32.totalorder %s2430_s21, 0 }
  0xc2   : > { %s550_s11 = scalar_select %p549_p3, %s2430_s21, 1 }
  0xc3   : > { %557 = sbr.rel (%p2964_p9) target bundleno = 545 (0x221), region = 80  ;;  %v558_v0 = vld [vmem:[%s2901_s0] sm:$0xff] (!%p2964_p9)  ;;  %v2341_v2 = vmov (!%p2964_p9), 0   ;;  %v2342_v3 = vmov (!%p2964_p9), 0.0   ;;  %v1919_v5 = vld [vmem:[%s2902_s1 + $0x8] sm:$0xff] (!%p2964_p9)   ;;  %v1920_v7 = vld [vmem:[%s2902_s1 + $0x10] sm:$0xff] (!%p2964_p9)   ;;  %v563_v13 = vlaneseq (!%p2964_p9) }
  0xc4   : > { %s1664_s23 = sshll.u32 %s550_s11, 2  ;;  %v1918_v1 = vld [vmem:[%s2902_s1] sm:$0xff] (!%p2964_p9)   ;;  %1917 = vset.pattern.permute.xlu0 (!%p2964_p9), %v2341_v2  ;;  %vm559_vm0 = vcmp.gt.s32.totalorder (!%p2964_p9), %v558_v0, 0  ;;  %1782 = vmatprep.subr.bf16.mxu0 (!%p2964_p9), %v2342_v3  ;;  %vm2343_vm2 = vmmov (!%p2964_p9), 0   ;;  %v1921_v8 = vld [vmem:[%s2902_s1 + $0x18] sm:$0xff] (!%p2964_p9)   ;;  %v1923_v10 = vld [vmem:[%s2902_s1 + $0x28] sm:$0xff] (!%p2964_p9)  }
  0xc5   : > { %s2688_s15 = scalar_lea.vmem %s2905_s4, %s1664_s23  ;;  %v560_v4 = vsel (!%p2964_p9), %vm559_vm0, %v558_v0, 0  ;;  %1783 = vmatpush3.bf16.msra.mxu0 (!%p2964_p9), %v1918_v1  ;;  %1798 = vmatprep.mubr.msk.bf16.mxu0 (!%p2964_p9), %vm2343_vm2, %v2342_v3  ;;  %v1922_v9 = vld [vmem:[%s2902_s1 + $0x20] sm:$0xff] (!%p2964_p9)   ;;  %v1924_v11 = vld [vmem:[%s2902_s1 + $0x30] sm:$0xff] (!%p2964_p9)   ;;  %v1925_v12 = vld [vmem:[%s2902_s1 + $0x38] sm:$0xff] (!%p2964_p9)   ;;  %v564_v14 = vand.u32 (!%p2964_p9), 127, %v563_v13 }
  0xc6   : > { %vm561_vm1 = vcmp.lt.s32.totalorder (!%p2964_p9), %v560_v4, 127  ;;  %1784 = vmatprep.subr.bf16.mxu0 (!%p2964_p9), %v2342_v3  ;;  %v2344_v16 = vmov (!%p2964_p9), 1.0|1.0  }
  0xc7   : > { %v562_v6 = vsel (!%p2964_p9), %vm561_vm1, %v560_v4, 127 }
  0xc8   : > { %566 = vperm.xlu0 (!%p2964_p9), %1917, %v562_v6  }
  0xc9   : > { %1785 = vmatpush3.bf16.msra.mxu0 (!%p2964_p9), %v1919_v5 }
  0xca   : > { %1786 = vmatprep.subr.bf16.mxu0 %v2342_v3 }
  0xcd   : > { %1787 = vmatpush3.bf16.msra.mxu0 %v1920_v7 }
  0xce   : > { %1788 = vmatprep.subr.bf16.mxu0 %v2342_v3 }
  0xd1   : > { %1789 = vmatpush3.bf16.msra.mxu0 %v1921_v8 }
  0xd2   : > { %1790 = vmatprep.subr.bf16.mxu0 %v2342_v3 }
  0xd5   : > { %1791 = vmatpush3.bf16.msra.mxu0 %v1922_v9 }
  0xd6   : > { %1792 = vmatprep.subr.bf16.mxu0 %v2342_v3 }
  0xd9   : > { %1793 = vmatpush3.bf16.msra.mxu0 %v1923_v10 }
  0xda   : > { %1794 = vmatprep.subr.bf16.mxu0 %v2342_v3 }
  0xdd   : > { %1795 = vmatpush3.bf16.msra.mxu0 %v1924_v11 }
  0xde   : > { %1796 = vmatprep.subr.bf16.mxu0 %v2342_v3 }
  0xe1   : > { %1797 = vmatpush3.bf16.msra.mxu0 %v1925_v12 }
 0x147   : > { %v567_v15 = vpop.permute.xlu0 %566 }
 0x148   : > { %vm568_vm3 = vcmp.eq.s32.totalorder %v567_v15, %v564_v14 }
 0x149   : > { %vm1675_vm4 = vmpackc.low %vm568_vm3, %vm568_vm3 }
 0x14a   : > { %1799 = vmatmul.mubr.msk.bf16.vlgmr.msra.gmra.mrb[0].mxu0 %vm1675_vm4, %v2344_v16 }
 0x21d   : > { %v670_v17 = vpop.f32.mrb[0].mxu0 }
 0x21e   : > { %v676_v18 = vpack.c.bf16 %v670_v17, %v670_v17  ;;  %v1800_v19 = vpop.f32.mrb[1].mxu0 }
 0x21f   : > { %v673_v20 = vpop.f32.mrb[2].mxu0 }
 0x220   : > { %677 = vst [vmem:[#allocation2] sm:$0xf] %v676_v18  ;;  %v1801_v21 = vpop.f32.mrb[3].mxu0 }
 0x221 PF: > { %v1926_v22 = vld [vmem:[%s2664_s12 + $0x4] ss:$16 sps:$4 sm:$0xff]   ;;  %v1928_v23 = vld [vmem:[%s2664_s12 + $0xc] ss:$16 sps:$4 sm:$0xff]   ;;  %v2345_v24 = vmov 0   ;;  %p1744_p10 = scmp.ne.s32.totalorder %s2430_s21, 1 }
 0x222   : > { %938 = vmatprep.mubr.bf16.mxu0 %v2345_v24  ;;  %979 = vmatprep.mubr.bf16.mxu1 %v2345_v24  ;;  %v1930_v25 = vld [vmem:[%s2664_s12] ss:$16 sps:$4 sm:$0xff]   ;;  %v1931_v26 = vld [vmem:[%s2664_s12 + $0x8] ss:$16 sps:$4 sm:$0xff]   ;;  %v1932_v27 = vld [vmem:[%s2664_s12 + $0x24] ss:$16 sps:$4 sm:$0xff]  }
 0x223   : > { %906 = vmatprep.subr.bf16.mxu0 %v1926_v22  ;;  %947 = vmatprep.subr.bf16.mxu1 %v1928_v23  ;;  %v1934_v28 = vld [vmem:[%s2664_s12 + $0x2c] ss:$16 sps:$4 sm:$0xff]   ;;  %v1936_v29 = vld [vmem:[%s2664_s12 + $0x20] ss:$16 sps:$4 sm:$0xff]   ;;  %v1937_v30 = vld [vmem:[%s2664_s12 + $0x28] ss:$16 sps:$4 sm:$0xff]  }
 0x224   : > { %907 = vmatpush1.bf16.msra.mxu0 %v1930_v25  ;;  %948 = vmatpush1.bf16.msra.mxu1 %v1931_v26  ;;  %v1938_v31 = vld [vmem:[%s2664_s12 + $0x44] ss:$16 sps:$4 sm:$0xff]   ;;  %v1940_v32 = vld [vmem:[%s2664_s12 + $0x4c] ss:$16 sps:$4 sm:$0xff]   ;;  %v1942_v33 = vld [vmem:[%s2664_s12 + $0x40] ss:$16 sps:$4 sm:$0xff]  }
 0x225   : > { %908 = vmatprep.subr.bf16.mxu0 %v1932_v27  ;;  %949 = vmatprep.subr.bf16.mxu1 %v1934_v28  ;;  %v1943_v34 = vld [vmem:[%s2664_s12 + $0x48] ss:$16 sps:$4 sm:$0xff]   ;;  %v1944_v35 = vld [vmem:[%s2664_s12 + $0x64] ss:$16 sps:$4 sm:$0xff]   ;;  %v1946_v36 = vld [vmem:[%s2664_s12 + $0x6c] ss:$16 sps:$4 sm:$0xff]  }
 0x226   : > { %v1948_v37 = vld [vmem:[%s2664_s12 + $0x60] ss:$16 sps:$4 sm:$0xff]   ;;  %v1949_v38 = vld [vmem:[%s2664_s12 + $0x68] ss:$16 sps:$4 sm:$0xff]   ;;  %v1950_v39 = vld [vmem:[%s2664_s12 + $0x84] ss:$16 sps:$4 sm:$0xff]  }
 0x227   : > { %v1952_v40 = vld [vmem:[%s2664_s12 + $0x8c] ss:$16 sps:$4 sm:$0xff]   ;;  %v1954_v41 = vld [vmem:[%s2664_s12 + $0x80] ss:$16 sps:$4 sm:$0xff]   ;;  %v1955_v42 = vld [vmem:[%s2664_s12 + $0x88] ss:$16 sps:$4 sm:$0xff]  }
 0x228   : > { %909 = vmatpush1.bf16.msra.mxu0 %v1936_v29  ;;  %950 = vmatpush1.bf16.msra.mxu1 %v1937_v30  ;;  %v1956_v43 = vld [vmem:[%s2664_s12 + $0xa4] ss:$16 sps:$4 sm:$0xff]   ;;  %v1958_v44 = vld [vmem:[%s2664_s12 + $0xac] ss:$16 sps:$4 sm:$0xff]   ;;  %v1960_v45 = vld [vmem:[%s2664_s12 + $0xa0] ss:$16 sps:$4 sm:$0xff]  }
 0x229   : > { %910 = vmatprep.subr.bf16.mxu0 %v1938_v31  ;;  %951 = vmatprep.subr.bf16.mxu1 %v1940_v32  ;;  %v1961_v46 = vld [vmem:[%s2664_s12 + $0xa8] ss:$16 sps:$4 sm:$0xff]   ;;  %v1962_v47 = vld [vmem:[%s2664_s12 + $0xc4] ss:$16 sps:$4 sm:$0xff]   ;;  %v1964_v48 = vld [vmem:[%s2664_s12 + $0xcc] ss:$16 sps:$4 sm:$0xff]  }
 0x22a   : > { %v1966_v49 = vld [vmem:[%s2664_s12 + $0xc0] ss:$16 sps:$4 sm:$0xff]   ;;  %v1967_v50 = vld [vmem:[%s2664_s12 + $0xc8] ss:$16 sps:$4 sm:$0xff]   ;;  %v1968_v51 = vld [vmem:[%s2664_s12 + $0xe4] ss:$16 sps:$4 sm:$0xff]  }
 0x22b   : > { %v1970_v52 = vld [vmem:[%s2664_s12 + $0xec] ss:$16 sps:$4 sm:$0xff]   ;;  %v1972_v53 = vld [vmem:[%s2664_s12 + $0xe0] ss:$16 sps:$4 sm:$0xff]   ;;  %v1973_v54 = vld [vmem:[%s2664_s12 + $0xe8] ss:$16 sps:$4 sm:$0xff]  }
 0x22c   : > { %911 = vmatpush1.bf16.msra.mxu0 %v1942_v33  ;;  %952 = vmatpush1.bf16.msra.mxu1 %v1943_v34  ;;  %v679_v55 = vld [vmem:[%s473_s9] sm:$0xff]  ;;  %v678_v25 = vld [vmem:[#allocation2] sm:$0xf]  ;;  %v1232_v34 = vlaneseq  ;;  %vm2347_vm5 = vmmov (!%p1744_p10), 0  }
 0x22d   : > { %912 = vmatprep.subr.bf16.mxu0 %v1944_v35  ;;  %953 = vmatprep.subr.bf16.mxu1 %v1946_v36  ;;  %v1976_v56 = vld [vmem:[%s2654_s24 + $0x4] ss:$16 sps:$4 sm:$0xff]   ;;  %v1979_v57 = vld [vmem:[%s2654_s24 + $0xc] ss:$16 sps:$4 sm:$0xff]   ;;  %v713_v58 = vpack.c.bf16 %v679_v55, %v679_v55  ;;  %v1974_v59 = vld [vmem:[%s2654_s24] ss:$16 sps:$4 sm:$0xff]  }
 0x22e   : > { %v1977_v60 = vld [vmem:[%s2654_s24 + $0x8] ss:$16 sps:$4 sm:$0xff]   ;;  %v1982_v61 = vld [vmem:[%s2654_s24 + $0x24] ss:$16 sps:$4 sm:$0xff]   ;;  %v1985_v62 = vld [vmem:[%s2654_s24 + $0x2c] ss:$16 sps:$4 sm:$0xff]  }
 0x22f   : > { %v1980_v63 = vld [vmem:[%s2654_s24 + $0x20] ss:$16 sps:$4 sm:$0xff]   ;;  %v1983_v0 = vld [vmem:[%s2654_s24 + $0x28] ss:$16 sps:$4 sm:$0xff]   ;;  %v1988_v1 = vld [vmem:[%s2654_s24 + $0x44] ss:$16 sps:$4 sm:$0xff]  }
 0x230   : > { %913 = vmatpush1.bf16.msra.mxu0 %v1948_v37  ;;  %954 = vmatpush1.bf16.msra.mxu1 %v1949_v38  ;;  %v1991_v2 = vld [vmem:[%s2654_s24 + $0x4c] ss:$16 sps:$4 sm:$0xff]   ;;  %v1986_v3 = vld [vmem:[%s2654_s24 + $0x40] ss:$16 sps:$4 sm:$0xff]   ;;  %v1989_v4 = vld [vmem:[%s2654_s24 + $0x48] ss:$16 sps:$4 sm:$0xff]  }
 0x231   : > { %914 = vmatprep.subr.bf16.mxu0 %v1950_v39  ;;  %955 = vmatprep.subr.bf16.mxu1 %v1952_v40  ;;  %v1994_v5 = vld [vmem:[%s2654_s24 + $0x64] ss:$16 sps:$4 sm:$0xff]   ;;  %v1997_v6 = vld [vmem:[%s2654_s24 + $0x6c] ss:$16 sps:$4 sm:$0xff]   ;;  %v1992_v7 = vld [vmem:[%s2654_s24 + $0x60] ss:$16 sps:$4 sm:$0xff]  }
 0x232   : > { %v1995_v8 = vld [vmem:[%s2654_s24 + $0x68] ss:$16 sps:$4 sm:$0xff]   ;;  %v2000_v9 = vld [vmem:[%s2654_s24 + $0x84] ss:$16 sps:$4 sm:$0xff]   ;;  %v2003_v10 = vld [vmem:[%s2654_s24 + $0x8c] ss:$16 sps:$4 sm:$0xff]  }
 0x233   : > { %v1998_v11 = vld [vmem:[%s2654_s24 + $0x80] ss:$16 sps:$4 sm:$0xff]   ;;  %v2001_v12 = vld [vmem:[%s2654_s24 + $0x88] ss:$16 sps:$4 sm:$0xff]   ;;  %v2006_v13 = vld [vmem:[%s2654_s24 + $0xa4] ss:$16 sps:$4 sm:$0xff]  }
 0x234   : > { %915 = vmatpush1.bf16.msra.mxu0 %v1954_v41  ;;  %956 = vmatpush1.bf16.msra.mxu1 %v1955_v42  ;;  %v2009_v14 = vld [vmem:[%s2654_s24 + $0xac] ss:$16 sps:$4 sm:$0xff]   ;;  %v2004_v15 = vld [vmem:[%s2654_s24 + $0xa0] ss:$16 sps:$4 sm:$0xff]   ;;  %v2007_v16 = vld [vmem:[%s2654_s24 + $0xa8] ss:$16 sps:$4 sm:$0xff]  }
 0x235   : > { %916 = vmatprep.subr.bf16.mxu0 %v1956_v43  ;;  %957 = vmatprep.subr.bf16.mxu1 %v1958_v44  ;;  %v2012_v17 = vld [vmem:[%s2654_s24 + $0xc4] ss:$16 sps:$4 sm:$0xff]   ;;  %v2015_v18 = vld [vmem:[%s2654_s24 + $0xcc] ss:$16 sps:$4 sm:$0xff]   ;;  %v2010_v19 = vld [vmem:[%s2654_s24 + $0xc0] ss:$16 sps:$4 sm:$0xff]  }
 0x236   : > { %v2013_v20 = vld [vmem:[%s2654_s24 + $0xc8] ss:$16 sps:$4 sm:$0xff]   ;;  %v2018_v21 = vld [vmem:[%s2654_s24 + $0xe4] ss:$16 sps:$4 sm:$0xff]   ;;  %v2021_v22 = vld [vmem:[%s2654_s24 + $0xec] ss:$16 sps:$4 sm:$0xff]  }
 0x237   : > { %v2016_v23 = vld [vmem:[%s2654_s24 + $0xe0] ss:$16 sps:$4 sm:$0xff]   ;;  %v1233_v35 = vshrl.u32 %v1232_v34, 7  ;;  %v1230_v37 = vld [vmem:[%s2688_s15] sm:$0xf] }
 0x238   : > { %917 = vmatpush1.bf16.msra.mxu0 %v1960_v45  ;;  %958 = vmatpush1.bf16.msra.mxu1 %v1961_v46 }
 0x239   : > { %918 = vmatprep.subr.bf16.mxu0 %v1962_v47  ;;  %959 = vmatprep.subr.bf16.mxu1 %v1964_v48  ;;  %v1234_v36 = vsub.s32 0, %v1233_v35  ;;  %v1238_v38 = vsub.s32 1, %v1233_v35 }
 0x23b   : > { %v1235_v39 = vrot.slane %v1230_v37, %v1234_v36  ;;  %v1239_v42 = vrot.slane %v1230_v37, %v1238_v38 }
 0x23c   : > { %919 = vmatpush1.bf16.msra.mxu0 %v1966_v49  ;;  %960 = vmatpush1.bf16.msra.mxu1 %v1967_v50 }
 0x23d   : > { %920 = vmatprep.subr.bf16.mxu0 %v1968_v51  ;;  %961 = vmatprep.subr.bf16.mxu1 %v1970_v52  ;;  %v1242_v52 = vsub.s32 2, %v1233_v35 }
 0x240   : > { %921 = vmatpush1.bf16.msra.mxu0 %v1972_v53  ;;  %962 = vmatpush1.bf16.msra.mxu1 %v1973_v54 }
 0x241   : > { %1148 = vmatprep.subr.bf16.mxu0 %v1976_v56  ;;  %1189 = vmatprep.subr.bf16.mxu1 %v1979_v57 }
 0x243   : > { %939 = vmatmul.mubr.bf16.vlgmr.msra.gmra.mrb[0].mxu0 %v713_v58  ;;  %980 = vmatmul.mubr.bf16.vlgmr.msra.gmra.mrb[0].mxu1 %v713_v58  ;;  %v1246_v58 = vsub.s32 3, %v1233_v35 }
 0x244   : > { %1149 = vmatpush1.bf16.msra.mxu0 %v1974_v59  ;;  %1190 = vmatpush1.bf16.msra.mxu1 %v1977_v60  ;;  %v1243_v59 = vrot.slane %v1230_v37, %v1242_v52 }
 0x245   : > { %1150 = vmatprep.subr.bf16.mxu0 %v1982_v61  ;;  %1191 = vmatprep.subr.bf16.mxu1 %v1985_v62  ;;  %v1247_v60 = vrot.slane %v1230_v37, %v1246_v58 }
 0x246   : > { %1180 = vmatprep.mubr.bf16.mxu0 %v2345_v24  ;;  %1221 = vmatprep.mubr.bf16.mxu1 %v2345_v24  ;;  %v2019_v24 = vld [vmem:[%s2654_s24 + $0xe8] ss:$16 sps:$4 sm:$0xff]  }
 0x248   : > { %1151 = vmatpush1.bf16.msra.mxu0 %v1980_v63  ;;  %1192 = vmatpush1.bf16.msra.mxu1 %v1983_v0 }
 0x249   : > { %1152 = vmatprep.subr.bf16.mxu0 %v1988_v1  ;;  %1193 = vmatprep.subr.bf16.mxu1 %v1991_v2 }
 0x24c   : > { %1153 = vmatpush1.bf16.msra.mxu0 %v1986_v3  ;;  %1194 = vmatpush1.bf16.msra.mxu1 %v1989_v4 }
 0x24d   : > { %1154 = vmatprep.subr.bf16.mxu0 %v1994_v5  ;;  %1195 = vmatprep.subr.bf16.mxu1 %v1997_v6 }
 0x250   : > { %1155 = vmatpush1.bf16.msra.mxu0 %v1992_v7  ;;  %1196 = vmatpush1.bf16.msra.mxu1 %v1995_v8  ;;  %v680_v7 = vld [vmem:[%s482_s3] sm:$0xff] }
 0x251   : > { %1156 = vmatprep.subr.bf16.mxu0 %v2000_v9  ;;  %1197 = vmatprep.subr.bf16.mxu1 %v2003_v10 }
 0x254   : > { %1157 = vmatpush1.bf16.msra.mxu0 %v1998_v11  ;;  %1198 = vmatpush1.bf16.msra.mxu1 %v2001_v12 }
 0x255   : > { %1158 = vmatprep.subr.bf16.mxu0 %v2006_v13  ;;  %1199 = vmatprep.subr.bf16.mxu1 %v2009_v14 }
 0x258   : > { %1159 = vmatpush1.bf16.msra.mxu0 %v2004_v15  ;;  %1200 = vmatpush1.bf16.msra.mxu1 %v2007_v16 }
 0x259   : > { %1160 = vmatprep.subr.bf16.mxu0 %v2012_v17  ;;  %1201 = vmatprep.subr.bf16.mxu1 %v2015_v18  ;;  %v2038_v17 = vld [vmem:[#allocation11] sm:$0xff] (!%p1744_p10)   ;;  %v2346_v18 = vmov (!%p1744_p10), 0.0  }
 0x25c   : > { %1161 = vmatpush1.bf16.msra.mxu0 %v2010_v19  ;;  %1202 = vmatpush1.bf16.msra.mxu1 %v2013_v20  ;;  %v2039_v19 = vld [vmem:[#allocation11 + $0x8] sm:$0xff] (!%p1744_p10)   ;;  %v2040_v20 = vld [vmem:[#allocation11 + $0x10] sm:$0xff] (!%p1744_p10)  }
 0x25d   : > { %1162 = vmatprep.subr.bf16.mxu0 %v2018_v21  ;;  %1203 = vmatprep.subr.bf16.mxu1 %v2021_v22  ;;  %v2041_v21 = vld [vmem:[#allocation11 + $0x18] sm:$0xff] (!%p1744_p10)   ;;  %v2042_v22 = vld [vmem:[#allocation11 + $0x20] sm:$0xff] (!%p1744_p10)  }
 0x260   : > { %1163 = vmatpush1.bf16.msra.mxu0 %v2016_v23  ;;  %1204 = vmatpush1.bf16.msra.mxu1 %v2019_v24  ;;  %v2043_v23 = vld [vmem:[#allocation11 + $0x28] sm:$0xff] (!%p1744_p10)   ;;  %v2044_v24 = vld [vmem:[#allocation11 + $0x30] sm:$0xff] (!%p1744_p10)  }
 0x261   : > { %1802 = vmatprep.subr.bf16.mxu0 (!%p1744_p10), %v2346_v18 }
 0x263   : > { %1181 = vmatmul.mubr.bf16.vlgmr.msra.gmra.mrb[4].mxu0 %v678_v25  ;;  %1222 = vmatmul.mubr.bf16.vlgmr.msra.gmra.mrb[4].mxu1 %v678_v25  ;;  %v2045_v25 = vld [vmem:[#allocation11 + $0x38] sm:$0xff] (!%p1744_p10)  }
 0x264   : > { %1803 = vmatpush3.bf16.msra.mxu0 (!%p1744_p10), %v2038_v17  ;;  %1818 = vmatprep.mubr.msk.bf16.mxu0 (!%p1744_p10), %vm2347_vm5, %v2346_v18 }
 0x265   : > { %1804 = vmatprep.subr.bf16.mxu0 (!%p1744_p10), %v2346_v18 }
 0x268   : > { %1805 = vmatpush3.bf16.msra.mxu0 (!%p1744_p10), %v2039_v19 }
 0x269   : > { %1806 = vmatprep.subr.bf16.mxu0 (!%p1744_p10), %v2346_v18 }
 0x26c   : > { %1807 = vmatpush3.bf16.msra.mxu0 (!%p1744_p10), %v2040_v20 }
 0x26d   : > { %1808 = vmatprep.subr.bf16.mxu0 (!%p1744_p10), %v2346_v18 }
 0x270   : > { %1809 = vmatpush3.bf16.msra.mxu0 (!%p1744_p10), %v2041_v21 }
 0x271   : > { %1810 = vmatprep.subr.bf16.mxu0 (!%p1744_p10), %v2346_v18 }
 0x274   : > { %1811 = vmatpush3.bf16.msra.mxu0 (!%p1744_p10), %v2042_v22 }
 0x275   : > { %1812 = vmatprep.subr.bf16.mxu0 (!%p1744_p10), %v2346_v18 }
 0x278   : > { %1813 = vmatpush3.bf16.msra.mxu0 (!%p1744_p10), %v2043_v23 }
 0x279   : > { %1814 = vmatprep.subr.bf16.mxu0 (!%p1744_p10), %v2346_v18 }
 0x27c   : > { %1815 = vmatpush3.bf16.msra.mxu0 (!%p1744_p10), %v2044_v24 }
 0x27d   : > { %1816 = vmatprep.subr.bf16.mxu0 (!%p1744_p10), %v2346_v18 }
 0x280   : > { %1817 = vmatpush3.bf16.msra.mxu0 (!%p1744_p10), %v2045_v25 }
 0x316   : > { %v940_v26 = vpop.f32.mrb[0].mxu0  ;;  %v981_v27 = vpop.f32.mrb[0].mxu1 }
 0x317   : > { %v942_v28 = vpop.f32.mrb[1].mxu0  ;;  %v983_v29 = vpop.f32.mrb[1].mxu1 }
 0x318   : > { %v944_v30 = vpop.f32.mrb[2].mxu0  ;;  %v985_v31 = vpop.f32.mrb[2].mxu1 }
 0x319   : > { %v945_v32 = vpop.f32.mrb[3].mxu0  ;;  %v986_v33 = vpop.f32.mrb[3].mxu1 }
 0x336   : > { %v1182_v40 = vpop.f32.mrb[4].mxu0  ;;  %v1223_v41 = vpop.f32.mrb[4].mxu1 }
 0x337   : > { %v1183_v43 = vadd.f32 %v1182_v40, %v940_v26  ;;  %v1224_v44 = vadd.f32 %v1223_v41, %v981_v27  ;;  %v1184_v45 = vpop.f32.mrb[5].mxu0  ;;  %v1225_v46 = vpop.f32.mrb[5].mxu1  ;;  %v1745_v26 = vld [vmem:[%s2909_s8] ss:$0 sm:$0xff] (!%p1744_p10) }
 0x338   : > { %v1185_v47 = vadd.f32 %v1184_v45, %v942_v28  ;;  %v1226_v48 = vadd.f32 %v1225_v46, %v983_v29  ;;  %v1186_v49 = vpop.f32.mrb[6].mxu0  ;;  %v1227_v50 = vpop.f32.mrb[6].mxu1 }
 0x339   : > { %v1252_v51 = vadd.f32 %v1235_v39, %v1183_v43  ;;  %v1187_v53 = vpop.f32.mrb[7].mxu0  ;;  %v1228_v54 = vpop.f32.mrb[7].mxu1  ;;  %v1254_v61 = vadd.f32 %v1243_v59, %v1224_v44 }
 0x33a   : > { %v1253_v55 = vadd.f32 %v1239_v42, %v1185_v47  ;;  %v1255_v62 = vadd.f32 %v1247_v60, %v1226_v48 }
 0x33b   : > { %v1741_v56 = vmul.f32 -1.442695, %v1252_v51  ;;  %v1743_v63 = vmul.f32 -1.442695, %v1254_v61 }
 0x33c   : > { %v1742_v57 = vmul.f32 -1.442695, %v1253_v55 }
 0x33d   : > { %2022 = vpow2.f32 %v1741_v56 }
 0x33e   : > { %2024 = vpow2.f32 %v1742_v57 }
 0x33f   : > { %2026 = vtanh.f32 %v1255_v62 }
 0x340   : > { %2028 = vpow2.f32 %v1743_v63 }
 0x347   : > { %v2023_v0 = vpop.eup %2022 }
 0x348   : > { %v1265_v1 = vadd.f32 1.0, %v2023_v0  ;;  %v2025_v2 = vpop.eup %2024 }
 0x349   : > { %v1266_v3 = vadd.f32 1.0, %v2025_v2  ;;  %v2027_v4 = vpop.eup %2026 }
 0x34a   : > { %2030 = vrcp.f32 %v1265_v1  ;;  %v2029_v5 = vpop.eup %2028 }
 0x34b   : > { %2032 = vrcp.f32 %v1266_v3  ;;  %v1267_v10 = vadd.f32 1.0, %v2029_v5 }
 0x34d   : > { %2034 = vrcp.f32 %v1267_v10 }
 0x354   : > { %v2031_v6 = vpop.eup %2030 }
 0x355   : > { %v1276_v8 = vmul.f32 %v2031_v6, %v2027_v4  ;;  %v2033_v9 = vpop.eup %2032 }
 0x356   : > { %v1275_v11 = vmul.f32 %v2033_v9, %v680_v7 }
 0x357   : > { %v2035_v13 = vpop.eup %2034 }
 0x358   : > { %v1277_v12 = vadd.f32 %v1276_v8, %v1275_v11 }
 0x35a   : > { %2036 = vtanh.f32 %v1277_v12  ;;  %1281 = vst [vmem:[%s548_s16] sm:$0xff] %v1277_v12 }
 0x363   : > { %1287 = sbr.rel (%p1744_p10) target bundleno = 1088 (0x440), region = 84 }
 0x364   : > { %v2037_v14 = vpop.eup %2036 }
 0x365   : > { %v1279_v15 = vmul.f32 %v2037_v14, %v2035_v13 }
 0x367   : > { %1280 = vst [vmem:[%s541_s28] sm:$0xff] %v1279_v15  ;;  %v1282_v16 = vpack.c.bf16 %v1279_v15, %v1279_v15 }
 0x369   : > { %1283 = vst [vmem:[#allocation2] sm:$0xf] %v1282_v16  ;;  %1819 = vmatmul.mubr.bf16.vlgmr.msra.gmra.mrb[0].mxu0 (!%p1744_p10), %v1282_v16 }
 0x43c   : > { %v1393_v27 = vpop.f32.mrb[0].mxu0 }
 0x43d   : > { %v1394_v28 = vadd.f32 %v1745_v26, %v1393_v27  ;;  %v1820_v29 = vpop.f32.mrb[1].mxu0 }
 0x43e   : > { %v1396_v30 = vpop.f32.mrb[2].mxu0 }
 0x43f   : > { %1399 = vst [vmem:[#allocation12] sm:$0xff] %v1394_v28  ;;  %v1821_v31 = vpop.f32.mrb[3].mxu0 }
 0x440 PF: > { %s2965_s9 = sld [smem:[#allocation25_spill]]  ;;  %s1757_s3 = sshll.u32 %s2430_s21, 7 }
 0x441   : > { %s2966_s29 = sld [smem:[#allocation31_spill]]  ;;  %s1430_s27 = sshll.u32 %s541_s28, 4  ;;  %s1431_s27 = int_to_ptr.vmem [resolvable:$true] %s1430_s27 }
 0x442   : > { %s1401_s11 = scalar_lea.sflag [#allocation14], %s2661_s19  ;;  %s2194_s23 = scalar_lea.vmem %s1431_s27, 128 }
 0x443   : > { %p2195_p8 = scmp.ne.s32.totalorder %s1431_s27, %s2194_s23  ;;  %s2348_s25 = smov [#allocation13]  }
 0x444   : > { %s2198_s10 = sshll.u32 %s2348_s25, 4  ;;  %s2199_s10 = int_to_ptr.vmem [resolvable:$false] %s2198_s10 }
 0x445   : > { %s2200_s7 = scalar_lea.vmem %s2199_s10, 256  ;;  %p2201_p4 = scmp.lt.s32.totalorder %s1431_s27, %s2199_s10 }
 0x446   : > { %p2967_p2 = scmp.ne.s32.totalorder %s2965_s9, 0  ;;  %p2202_p0 = scmp.lt.s32.totalorder %s2200_s7, %s2194_s23 }
 0x447   : > { %s2808_s14 = scalar_lea.hbm %s2966_s29, %s1757_s3 }
 0x448   : > { %p2196_p5 = pnand %p2195_p8, %p2967_p2  ;;  %p2203_p1 = por %p2202_p0, %p2201_p4 }
 0x44a   : > { %p2197_p7 = pneg %p2196_p5 }
 0x44c   : > { %p2204_p12 = pnand %p2203_p1, %p2197_p7 }
 0x44e   : > { %2207 = shalt.err (!%p2204_p12)
}
 0x44f   : > { %s2208_s28 = scalar_lea.hbm %s2808_s14, 128  ;;  %s2212_s17 = scalar_lea.hbm %s2966_s29, 256 }
 0x450   : > { %p2209_p11 = scmp.ne.s32.totalorder %s2808_s14, %s2208_s28  ;;  %p2213_p3 = scmp.lt.u32.totalorder %s2808_s14, %s2966_s29 }
 0x451   : > { %p2214_p9 = scmp.lt.u32.totalorder %s2212_s17, %s2208_s28  ;;  %p2216_p8 = scmp.lt.u32.totalorder %s2208_s28, %s2808_s14 }
 0x452   : > { %p2210_p6 = pnand %p2209_p11, %p2967_p2 }
 0x453   : > { %p2215_p10 = por %p2214_p9, %p2213_p3 }
 0x454   : > { %p2211_p13 = pneg %p2210_p6 }
 0x455   : > { %p2217_p5 = por %p2216_p8, %p2215_p10 }
 0x457   : > { %p2218_p7 = pnand %p2217_p5, %p2211_p13 }
 0x459   : > { %2221 = shalt.err (!%p2218_p7)
}
 0x45a   : > { %1836 = dma.vmem_to_hbm [thread:$0]  (%p2967_p2), %s1431_s27, 128, %s2808_s14, %s1401_s11  }
 0x45b   : > { %s2349_s12 = smov [#allocation12]   ;;  %s2968_s25 = sld [smem:[#allocation32_spill]] }
 0x45c   : > { %s1417_s15 = sshll.u32 %s2349_s12, 4  ;;  %s1443_s7 = sshll.u32 %s548_s16, 4  ;;  %s1418_s15 = int_to_ptr.vmem [resolvable:$true] %s1417_s15  ;;  %s1444_s7 = int_to_ptr.vmem [resolvable:$true] %s1443_s7 }
 0x45d   : > { %s2222_s28 = scalar_lea.vmem %s1418_s15, 128  ;;  %p2969_p0 = scmp.eq.s32.totalorder %s2430_s21, 1 }
 0x45e   : > { %p2223_p4 = scmp.ne.s32.totalorder %s1418_s15, %s2222_s28  ;;  %p2229_p11 = scmp.lt.s32.totalorder %s1418_s15, %s1418_s15 }
 0x45f   : > { %p2230_p6 = scmp.lt.s32.totalorder %s2222_s28, %s2222_s28 }
 0x460   : > { %p2224_p1 = pnand %p2223_p4, %p2969_p0 }
 0x461   : > { %s2837_s10 = scalar_lea.hbm %s2968_s25, %s1757_s3  ;;  %p2231_p13 = por %p2230_p6, %p2229_p11 }
 0x462   : > { %p2225_p12 = pneg %p2224_p1 }
 0x464   : > { %p2232_p3 = pnand %p2231_p13, %p2225_p12 }
 0x466   : > { %2235 = shalt.err (!%p2232_p3)
}
 0x467   : > { %s2970_s22 = sld [smem:[#allocation30_spill]]  ;;  %p2971_p10 = pmov %p2969_p0 }
 0x46d   : > { %s2236_s13 = scalar_lea.hbm %s2970_s22, 128 }
 0x46e   : > { %p2237_p9 = scmp.ne.s32.totalorder %s2970_s22, %s2236_s13  ;;  %p2242_p7 = scmp.lt.u32.totalorder %s2236_s13, %s2970_s22 }
 0x470   : > { %p2238_p8 = pnand %p2237_p9, %p2971_p10 }
 0x472   : > { %p2239_p5 = pneg %p2238_p8 }
 0x474   : > { %p2244_p4 = pnand %p2242_p7, %p2239_p5 }
 0x476   : > { %2247 = shalt.err (!%p2244_p4)
}
 0x477   : > { %1835 = dma.vmem_to_hbm [thread:$0]  (%p2969_p0), %s1418_s15, 128, %s2970_s22, [#allocation5]  }
 0x478   : > { %s2248_s12 = scalar_lea.vmem %s1444_s7, 128  ;;  %s2350_s2 = smov [#allocation15]  }
 0x479   : > { %p2249_p1 = scmp.ne.s32.totalorder %s1444_s7, %s2248_s12  ;;  %s2252_s23 = sshll.u32 %s2350_s2, 4  ;;  %s2253_s23 = int_to_ptr.vmem [resolvable:$false] %s2252_s23 }
 0x47a   : > { %s2254_s28 = scalar_lea.vmem %s2253_s23, 256  ;;  %p2255_p6 = scmp.lt.s32.totalorder %s1444_s7, %s2253_s23 }
 0x47b   : > { %p2250_p12 = pnand %p2249_p1, %p2967_p2  ;;  %p2256_p13 = scmp.lt.s32.totalorder %s2254_s28, %s2248_s12 }
 0x47d   : > { %p2251_p11 = pneg %p2250_p12  ;;  %p2257_p3 = por %p2256_p13, %p2255_p6 }
 0x47f   : > { %p2258_p9 = pnand %p2257_p3, %p2251_p11 }
 0x481   : > { %2261 = shalt.err (!%p2258_p9)
}
 0x482   : > { %s2262_s15 = scalar_lea.hbm %s2837_s10, 128  ;;  %s2266_s13 = scalar_lea.hbm %s2968_s25, 256 }
 0x483   : > { %p2263_p10 = scmp.ne.s32.totalorder %s2837_s10, %s2262_s15  ;;  %p2267_p7 = scmp.lt.u32.totalorder %s2837_s10, %s2968_s25 }
 0x484   : > { %p2268_p4 = scmp.lt.u32.totalorder %s2266_s13, %s2262_s15  ;;  %p2270_p1 = scmp.lt.u32.totalorder %s2262_s15, %s2837_s10 }
 0x485   : > { %p2264_p8 = pnand %p2263_p10, %p2967_p2 }
 0x486   : > { %p2269_p0 = por %p2268_p4, %p2267_p7 }
 0x487   : > { %p2265_p5 = pneg %p2264_p8 }
 0x488   : > { %p2271_p12 = por %p2270_p1, %p2269_p0 }
 0x48a   : > { %p2272_p11 = pnand %p2271_p12, %p2265_p5 }
 0x48c   : > { %2275 = shalt.err (!%p2272_p11)
}
 0x48d   : > { %1837 = dma.vmem_to_hbm [thread:$0]  (%p2967_p2), %s1444_s7, 128, %s2837_s10, %s1401_s11  }
 0x48e   : > { %p2972_p6 = scmp.eq.s32.totalorder %s2430_s21, 1 }
 0x490   : > { %2309 = dma.done.wait (%p2972_p6), [#allocation5], 128   ;;  %p2973_p13 = pmov %p2972_p6 }
 0x492   : > { %2311 = vsyncadd (%p2973_p13), [#allocation5], 4294967168 }
 0x493 PF: > { %s2974_s30 = sadd.s32 4294967294, %s2330_s20   ;;  %s2975_s16 = sld [smem:[#allocation26_spill]] }
 0x494   : > { %s1459_s26 = sand.u32 1, %s2974_s30   ;;  %p2977_p9 = scmp.ge.s32.totalorder %s2330_s20, 2 }
 0x495   : > { %s1460_s9 = scalar_lea.sflag [#allocation14], %s1459_s26 }
 0x499   : > { %p2976_p3 = scmp.ne.s32.totalorder %s2975_s16, 0 }
 0x49b   : > { %p1860_p10 = pnand %p2977_p9, %p2976_p3 }
 0x49d   : > { %2313 = dma.done.wait (!%p1860_p10), %s1460_s9, 256  }
 0x49e   : > { %2315 = vsyncadd (!%p1860_p10), %s1460_s9, 4294967040  ;;  %s2978_s20 = sld [smem:[#allocation23_spill]]  ;;  %s2979_s19 = sld [smem:[#allocation22_spill]] }
 0x49f   : > { %s2980_s11 = sld [smem:[#allocation24_spill]]  ;;  %s2981_s17 = smov %s2322_s18 }
 0x4a4   : > { %p32_p2 = scmp.ge.s32.totalorder %s2978_s20, 4   ;;  %s2982_s18 = smov %s2979_s19 }
 0x4a5   : > { %s2983_s19 = smov %s2980_s11 }
 0x4a6   :  { %34 = sbr.rel (!%p32_p2) target bundleno = 17 (0x11), region = 177 }
 0x4ad   :  { %1474 = vsyncpa [#allocation4], 1 }
 0x4ae   :  { %1476 = vsyncpa [#allocation4 + $0x1], 1 }
 0x4af   :  { %1477 = vsyncpa [#allocation7], 1 }
 0x4b0   :  { %1479 = vsyncpa [#allocation7 + $0x1], 1 }
 0x4b1   :  { %1480 = vsyncpa [#allocation10], 1 }
 0x4b2   :  { %1482 = vsyncpa [#allocation10 + $0x1], 1 }
 0x4b3   :  { %1483 = vsyncpa [#allocation5], 1 }
 0x4b4   :  { %1485 = vsyncpa [#allocation5 + $0x1], 1 }
 0x4b5   :  { %1486 = vsyncpa [#allocation14], 1 }
 0x4b6   :  { %1488 = vsyncpa [#allocation14 + $0x1], 1 }

</bundles_post_ra>
